<compile_context>
chip_gen: v7x
topology: tpu7x:2x2x1
jax: 0.10.0
libtpu: 0.0.40
codegen_flags: <defaults>
</compile_context>

<pallas_src>
import functools

import jax
import jax.numpy as jnp
from jax.experimental import pallas as pl
from jax.experimental.pallas import tpu as pltpu

HIDDEN = 32
NUM_LAYERS = 8


def ti_gcn_kernel(x_ref, adj_ref, pool_ref,
                  w1_ref, wr_ref, b_ref,
                  wf1_ref, bf1_ref, wf2_ref, bf2_ref,
                  out_ref):
    adj = adj_ref[...]                       # (N, N) bf16, normalized adjacency
    x = x_ref[...]                           # (N, F) f32

    # ---- conv1: project then aggregate (matches PyG GCNConv: A_norm @ (X W) + b) ----
    h = jnp.dot(x, w1_ref[...].astype(jnp.float32),
                preferred_element_type=jnp.float32)                              # (N, 32)
    agg = jnp.dot(adj, h.astype(jnp.bfloat16), preferred_element_type=jnp.float32)
    x = jnp.maximum(agg + b_ref[0:1, :], 0.0).astype(jnp.bfloat16)               # bias+ReLU

    # ---- conv2 .. conv8 (all 32 -> 32, bf16 x bf16 -> f32 acc on the MXU) ----
    for l in range(NUM_LAYERS - 1):
        h = jnp.dot(x, wr_ref[l], preferred_element_type=jnp.float32)            # (N, 32)
        agg = jnp.dot(adj, h.astype(jnp.bfloat16), preferred_element_type=jnp.float32)
        x = jnp.maximum(agg + b_ref[l + 1:l + 2, :], 0.0).astype(jnp.bfloat16)

    x = x.astype(jnp.float32)                # (N, 32) final node embeddings

    # ---- global_max_pool: per-graph max over member nodes ----
    member = pool_ref[...]                   # (N, G) f32 one-hot membership
    neg = jnp.float32(-3.0e38)
    num_graphs = out_ref.shape[0]
    rows = []
    for g in range(num_graphs):              # tiny static loop (G graphs)
        masked = jnp.where(member[:, g:g + 1] > 0, x, neg)                        # (N, 32)
        rows.append(jnp.max(masked, axis=0, keepdims=True))                       # (1, 32)
    pooled = jnp.concatenate(rows, axis=0)                                         # (G, 32)

    # ---- fc1 + ReLU + fc2 (single store of the final output) ----
    z = jnp.maximum(
        jnp.dot(pooled, wf1_ref[...], preferred_element_type=jnp.float32) + bf1_ref[...],
        0.0)
    out_ref[...] = (jnp.dot(z, wf2_ref[...], preferred_element_type=jnp.float32)
                    + bf2_ref[...])


def init_params(key, num_features, num_classes):
    """Synthetic init matching the shapes PyG GCNConv / nn.Linear allocate (weights (out, in))."""
    ks = jax.random.split(key, NUM_LAYERS + 4)

    def glorot(k, shape):
        fan_out, fan_in = shape
        lim = (6.0 / (fan_in + fan_out)) ** 0.5
        return jax.random.uniform(k, shape, jnp.float32, -lim, lim)

    conv_w, conv_b = [], []
    in_dim = num_features
    for l in range(NUM_LAYERS):
        conv_w.append(glorot(ks[l], (HIDDEN, in_dim)))          # GCNConv.lin weight (out, in)
        conv_b.append(jnp.zeros((HIDDEN,), jnp.float32))        # GCNConv bias (zeros, as in PyG)
        in_dim = HIDDEN

    wfc1 = glorot(ks[NUM_LAYERS + 0], (HIDDEN, HIDDEN))         # nn.Linear (out, in)
    bfc1 = jax.random.uniform(ks[NUM_LAYERS + 1], (HIDDEN,), jnp.float32, -0.1, 0.1)
    wfc2 = glorot(ks[NUM_LAYERS + 2], (num_classes, HIDDEN))
    bfc2 = jax.random.uniform(ks[NUM_LAYERS + 3], (num_classes,), jnp.float32, -0.1, 0.1)
    return (conv_w, conv_b, wfc1, bfc1, wfc2, bfc2)


@functools.partial(jax.jit, static_argnames=("num_graphs",))
def ti_gcn_forward(x, edge_index, mask, batch, params, num_graphs):
    # data.mask is unpacked by the reference forward but never used; kept for signature parity.
    del mask
    N = x.shape[0]
    src, dst = edge_index[0], edge_index[1]

    # GCNConv normalization (host-side glue): A_hat = A + remaining self loops,
    # deg = row sums of A_hat, adj_norm = D^-1/2 A_hat D^-1/2, message j -> i at row i.
    adj = jnp.zeros((N, N), jnp.float32).at[dst, src].add(1.0)
    diag = jnp.diagonal(adj)
    adj = adj + jnp.diag(jnp.where(diag == 0, 1.0, 0.0))
    deg = jnp.sum(adj, axis=1)
    dinv = jax.lax.rsqrt(deg)                                   # deg >= 1 (self loops)
    adj_norm = (dinv[:, None] * adj * dinv[None, :]).astype(jnp.bfloat16)

    # global_max_pool membership, node-major (N, G) so no transpose is needed in-kernel.
    member = (batch[:, None] == jnp.arange(num_graphs)[None, :]).astype(jnp.float32)

    conv_w, conv_b, wfc1, bfc1, wfc2, bfc2 = params
    w1 = conv_w[0].T.astype(jnp.bfloat16)                        # (F, 32)
    w_rest = jnp.stack([w.T for w in conv_w[1:]]).astype(jnp.bfloat16)   # (7, 32, 32)
    b_all = jnp.stack(conv_b)                                    # (8, 32) f32
    num_classes = wfc2.shape[0]

    inputs = (x, adj_norm, member,
              w1, w_rest, b_all,
              wfc1.T, bfc1.reshape(1, -1), wfc2.T, bfc2.reshape(1, -1))

    def full_spec(a):
        zeros = (0,) * a.ndim
        return pl.BlockSpec(a.shape, lambda i, zeros=zeros: zeros)

    return pl.pallas_call(
        ti_gcn_kernel,
        out_shape=jax.ShapeDtypeStruct((num_graphs, num_classes), jnp.float32),
        grid=(1,),
        in_specs=[full_spec(a) for a in inputs],
        out_specs=pl.BlockSpec((num_graphs, num_classes), lambda i: (0, 0)),
        compiler_params=pltpu.CompilerParams(dimension_semantics=("arbitrary",)),
    )(*inputs)


if __name__ == "__main__":
    key = jax.random.PRNGKey(0)
    kx, kp = jax.random.split(key, 2)

    # Small batch: 2 graphs x 8 nodes, 8 input features, 3 output classes.
    N, F, CLASSES, G = 16, 8, 3, 2

    x = jax.random.normal(kx, (N, F), jnp.float32)

    # Deterministic duplicate-free edge list: directed ring + chords inside each graph.
    ring_src = jnp.arange(8)
    ring_dst = (ring_src + 1) % 8
    chord_src = jnp.arange(0, 8, 2)
    chord_dst = (chord_src + 3) % 8
    src0 = jnp.concatenate([ring_src, chord_src])
    dst0 = jnp.concatenate([ring_dst, chord_dst])
    src = jnp.concatenate([src0, src0 + 8])
    dst = jnp.concatenate([dst0, dst0 + 8])
    edge_index = jnp.stack([src, dst]).astype(jnp.int32)        # (2, 24)

    mask = jnp.ones((N,), jnp.bool_)                            # present in data, unused by forward
    batch = jnp.concatenate([jnp.zeros(8, jnp.int32), jnp.ones(8, jnp.int32)])

    params = init_params(kp, F, CLASSES)

    out = ti_gcn_forward(x, edge_index, mask, batch, params, G)
    jax.block_until_ready(out)
    assert out.shape == (G, CLASSES)
    print("KERNEL_OK")
</pallas_src>

<mosaic_0001>
module attributes {stable_mosaic.version = 11 : i64} {
  func.func @ti_gcn_kernel(%arg0: i32, %arg1: memref<16x8xf32, #tpu.memory_space<vmem>>, %arg2: memref<16x16xbf16, #tpu.memory_space<vmem>>, %arg3: memref<16x2xf32, #tpu.memory_space<vmem>>, %arg4: memref<8x32xbf16, #tpu.memory_space<vmem>>, %arg5: memref<7x32x32xbf16, #tpu.memory_space<vmem>>, %arg6: memref<8x32xf32, #tpu.memory_space<vmem>>, %arg7: memref<32x32xf32, #tpu.memory_space<vmem>>, %arg8: memref<1x32xf32, #tpu.memory_space<vmem>>, %arg9: memref<32x3xf32, #tpu.memory_space<vmem>>, %arg10: memref<1x3xf32, #tpu.memory_space<vmem>>, %arg11: memref<2x3xf32, #tpu.memory_space<vmem>>) attributes {dimension_semantics = [#tpu.dimension_semantics<arbitrary>], iteration_bounds = array<i64: 1>, scalar_prefetch = 0 : i64, scratch_operands = 0 : i64, tpu.core_type = #tpu.core_type<tc>, window_params = [{pipeline_mode = #tpu.pipeline_mode<synchronous>, transform_indices = @transform_0, window_bounds = array<i64: 16, 8>}, {pipeline_mode = #tpu.pipeline_mode<synchronous>, transform_indices = @transform_1, window_bounds = array<i64: 16, 16>}, {pipeline_mode = #tpu.pipeline_mode<synchronous>, transform_indices = @transform_2, window_bounds = array<i64: 16, 2>}, {pipeline_mode = #tpu.pipeline_mode<synchronous>, transform_indices = @transform_3, window_bounds = array<i64: 8, 32>}, {pipeline_mode = #tpu.pipeline_mode<synchronous>, transform_indices = @transform_4, window_bounds = array<i64: 7, 32, 32>}, {pipeline_mode = #tpu.pipeline_mode<synchronous>, transform_indices = @transform_5, window_bounds = array<i64: 8, 32>}, {pipeline_mode = #tpu.pipeline_mode<synchronous>, transform_indices = @transform_6, window_bounds = array<i64: 32, 32>}, {pipeline_mode = #tpu.pipeline_mode<synchronous>, transform_indices = @transform_7, window_bounds = array<i64: 1, 32>}, {pipeline_mode = #tpu.pipeline_mode<synchronous>, transform_indices = @transform_8, window_bounds = array<i64: 32, 3>}, {pipeline_mode = #tpu.pipeline_mode<synchronous>, transform_indices = @transform_9, window_bounds = array<i64: 1, 3>}, {pipeline_mode = #tpu.pipeline_mode<synchronous>, transform_indices = @transform_10, window_bounds = array<i64: 2, 3>}]} {
    %c0 = arith.constant 0 : index
    %c0_0 = arith.constant 0 : index
    %0 = vector.load %arg2[%c0, %c0_0] : memref<16x16xbf16, #tpu.memory_space<vmem>>, vector<16x16xbf16>
    %c0_1 = arith.constant 0 : index
    %c0_2 = arith.constant 0 : index
    %1 = vector.load %arg1[%c0_1, %c0_2] : memref<16x8xf32, #tpu.memory_space<vmem>>, vector<16x8xf32>
    %c0_3 = arith.constant 0 : index
    %c0_4 = arith.constant 0 : index
    %2 = vector.load %arg4[%c0_3, %c0_4] : memref<8x32xbf16, #tpu.memory_space<vmem>>, vector<8x32xbf16>
    %3 = arith.extf %2 : vector<8x32xbf16> to vector<8x32xf32>
    %cst = arith.constant dense<0.000000e+00> : vector<16x32xf32>
    %4 = tpu.matmul %1, %3, %cst {dimension_numbers = #tpu.dot_dimension_numbers<[1], [0], [0], [1], [0, 0, 1, 1], [], []>} : vector<16x8xf32>, vector<8x32xf32>, vector<16x32xf32> -> vector<16x32xf32>
    %5 = arith.truncf %4 : vector<16x32xf32> to vector<16x32xbf16>
    %cst_5 = arith.constant dense<0.000000e+00> : vector<16x32xf32>
    %6 = tpu.matmul %0, %5, %cst_5 {dimension_numbers = #tpu.dot_dimension_numbers<[1], [0], [0], [1], [0, 0, 1, 1], [], []>} : vector<16x16xbf16>, vector<16x32xbf16>, vector<16x32xf32> -> vector<16x32xf32>
    %c0_6 = arith.constant 0 : index
    %c0_7 = arith.constant 0 : index
    %7 = vector.load %arg6[%c0_6, %c0_7] : memref<8x32xf32, #tpu.memory_space<vmem>>, vector<1x32xf32>
    %8 = vector.broadcast %7 : vector<1x32xf32> to vector<16x32xf32>
    %9 = arith.addf %6, %8 : vector<16x32xf32>
    %cst_8 = arith.constant 0.000000e+00 : f32
    %10 = vector.broadcast %cst_8 : f32 to vector<16x32xf32>
    %11 = arith.maximumf %9, %10 : vector<16x32xf32>
    %12 = arith.truncf %11 : vector<16x32xf32> to vector<16x32xbf16>
    %c0_9 = arith.constant 0 : index
    %c0_10 = arith.constant 0 : index
    %c0_11 = arith.constant 0 : index
    %13 = vector.load %arg5[%c0_9, %c0_10, %c0_11] : memref<7x32x32xbf16, #tpu.memory_space<vmem>>, vector<1x32x32xbf16>
    %14 = vector.shape_cast %13 : vector<1x32x32xbf16> to vector<32x32xbf16>
    %cst_12 = arith.constant dense<0.000000e+00> : vector<16x32xf32>
    %15 = tpu.matmul %12, %14, %cst_12 {dimension_numbers = #tpu.dot_dimension_numbers<[1], [0], [0], [1], [0, 0, 1, 1], [], []>} : vector<16x32xbf16>, vector<32x32xbf16>, vector<16x32xf32> -> vector<16x32xf32>
    %16 = arith.truncf %15 : vector<16x32xf32> to vector<16x32xbf16>
    %cst_13 = arith.constant dense<0.000000e+00> : vector<16x32xf32>
    %17 = tpu.matmul %0, %16, %cst_13 {dimension_numbers = #tpu.dot_dimension_numbers<[1], [0], [0], [1], [0, 0, 1, 1], [], []>} : vector<16x16xbf16>, vector<16x32xbf16>, vector<16x32xf32> -> vector<16x32xf32>
    %c1 = arith.constant 1 : index
    %c0_14 = arith.constant 0 : index
    %18 = vector.load %arg6[%c1, %c0_14] : memref<8x32xf32, #tpu.memory_space<vmem>>, vector<1x32xf32>
    %19 = vector.broadcast %18 : vector<1x32xf32> to vector<16x32xf32>
    %20 = arith.addf %17, %19 : vector<16x32xf32>
    %cst_15 = arith.constant 0.000000e+00 : f32
    %21 = vector.broadcast %cst_15 : f32 to vector<16x32xf32>
    %22 = arith.maximumf %20, %21 : vector<16x32xf32>
    %23 = arith.truncf %22 : vector<16x32xf32> to vector<16x32xbf16>
    %c1_16 = arith.constant 1 : index
    %c0_17 = arith.constant 0 : index
    %c0_18 = arith.constant 0 : index
    %24 = vector.load %arg5[%c1_16, %c0_17, %c0_18] : memref<7x32x32xbf16, #tpu.memory_space<vmem>>, vector<1x32x32xbf16>
    %25 = vector.shape_cast %24 : vector<1x32x32xbf16> to vector<32x32xbf16>
    %cst_19 = arith.constant dense<0.000000e+00> : vector<16x32xf32>
    %26 = tpu.matmul %23, %25, %cst_19 {dimension_numbers = #tpu.dot_dimension_numbers<[1], [0], [0], [1], [0, 0, 1, 1], [], []>} : vector<16x32xbf16>, vector<32x32xbf16>, vector<16x32xf32> -> vector<16x32xf32>
    %27 = arith.truncf %26 : vector<16x32xf32> to vector<16x32xbf16>
    %cst_20 = arith.constant dense<0.000000e+00> : vector<16x32xf32>
    %28 = tpu.matmul %0, %27, %cst_20 {dimension_numbers = #tpu.dot_dimension_numbers<[1], [0], [0], [1], [0, 0, 1, 1], [], []>} : vector<16x16xbf16>, vector<16x32xbf16>, vector<16x32xf32> -> vector<16x32xf32>
    %c2 = arith.constant 2 : index
    %c0_21 = arith.constant 0 : index
    %29 = vector.load %arg6[%c2, %c0_21] : memref<8x32xf32, #tpu.memory_space<vmem>>, vector<1x32xf32>
    %30 = vector.broadcast %29 : vector<1x32xf32> to vector<16x32xf32>
    %31 = arith.addf %28, %30 : vector<16x32xf32>
    %cst_22 = arith.constant 0.000000e+00 : f32
    %32 = vector.broadcast %cst_22 : f32 to vector<16x32xf32>
    %33 = arith.maximumf %31, %32 : vector<16x32xf32>
    %34 = arith.truncf %33 : vector<16x32xf32> to vector<16x32xbf16>
    %c2_23 = arith.constant 2 : index
    %c0_24 = arith.constant 0 : index
    %c0_25 = arith.constant 0 : index
    %35 = vector.load %arg5[%c2_23, %c0_24, %c0_25] : memref<7x32x32xbf16, #tpu.memory_space<vmem>>, vector<1x32x32xbf16>
    %36 = vector.shape_cast %35 : vector<1x32x32xbf16> to vector<32x32xbf16>
    %cst_26 = arith.constant dense<0.000000e+00> : vector<16x32xf32>
    %37 = tpu.matmul %34, %36, %cst_26 {dimension_numbers = #tpu.dot_dimension_numbers<[1], [0], [0], [1], [0, 0, 1, 1], [], []>} : vector<16x32xbf16>, vector<32x32xbf16>, vector<16x32xf32> -> vector<16x32xf32>
    %38 = arith.truncf %37 : vector<16x32xf32> to vector<16x32xbf16>
    %cst_27 = arith.constant dense<0.000000e+00> : vector<16x32xf32>
    %39 = tpu.matmul %0, %38, %cst_27 {dimension_numbers = #tpu.dot_dimension_numbers<[1], [0], [0], [1], [0, 0, 1, 1], [], []>} : vector<16x16xbf16>, vector<16x32xbf16>, vector<16x32xf32> -> vector<16x32xf32>
    %c3 = arith.constant 3 : index
    %c0_28 = arith.constant 0 : index
    %40 = vector.load %arg6[%c3, %c0_28] : memref<8x32xf32, #tpu.memory_space<vmem>>, vector<1x32xf32>
    %41 = vector.broadcast %40 : vector<1x32xf32> to vector<16x32xf32>
    %42 = arith.addf %39, %41 : vector<16x32xf32>
    %cst_29 = arith.constant 0.000000e+00 : f32
    %43 = vector.broadcast %cst_29 : f32 to vector<16x32xf32>
    %44 = arith.maximumf %42, %43 : vector<16x32xf32>
    %45 = arith.truncf %44 : vector<16x32xf32> to vector<16x32xbf16>
    %c3_30 = arith.constant 3 : index
    %c0_31 = arith.constant 0 : index
    %c0_32 = arith.constant 0 : index
    %46 = vector.load %arg5[%c3_30, %c0_31, %c0_32] : memref<7x32x32xbf16, #tpu.memory_space<vmem>>, vector<1x32x32xbf16>
    %47 = vector.shape_cast %46 : vector<1x32x32xbf16> to vector<32x32xbf16>
    %cst_33 = arith.constant dense<0.000000e+00> : vector<16x32xf32>
    %48 = tpu.matmul %45, %47, %cst_33 {dimension_numbers = #tpu.dot_dimension_numbers<[1], [0], [0], [1], [0, 0, 1, 1], [], []>} : vector<16x32xbf16>, vector<32x32xbf16>, vector<16x32xf32> -> vector<16x32xf32>
    %49 = arith.truncf %48 : vector<16x32xf32> to vector<16x32xbf16>
    %cst_34 = arith.constant dense<0.000000e+00> : vector<16x32xf32>
    %50 = tpu.matmul %0, %49, %cst_34 {dimension_numbers = #tpu.dot_dimension_numbers<[1], [0], [0], [1], [0, 0, 1, 1], [], []>} : vector<16x16xbf16>, vector<16x32xbf16>, vector<16x32xf32> -> vector<16x32xf32>
    %c4 = arith.constant 4 : index
    %c0_35 = arith.constant 0 : index
    %51 = vector.load %arg6[%c4, %c0_35] : memref<8x32xf32, #tpu.memory_space<vmem>>, vector<1x32xf32>
    %52 = vector.broadcast %51 : vector<1x32xf32> to vector<16x32xf32>
    %53 = arith.addf %50, %52 : vector<16x32xf32>
    %cst_36 = arith.constant 0.000000e+00 : f32
    %54 = vector.broadcast %cst_36 : f32 to vector<16x32xf32>
    %55 = arith.maximumf %53, %54 : vector<16x32xf32>
    %56 = arith.truncf %55 : vector<16x32xf32> to vector<16x32xbf16>
    %c4_37 = arith.constant 4 : index
    %c0_38 = arith.constant 0 : index
    %c0_39 = arith.constant 0 : index
    %57 = vector.load %arg5[%c4_37, %c0_38, %c0_39] : memref<7x32x32xbf16, #tpu.memory_space<vmem>>, vector<1x32x32xbf16>
    %58 = vector.shape_cast %57 : vector<1x32x32xbf16> to vector<32x32xbf16>
    %cst_40 = arith.constant dense<0.000000e+00> : vector<16x32xf32>
    %59 = tpu.matmul %56, %58, %cst_40 {dimension_numbers = #tpu.dot_dimension_numbers<[1], [0], [0], [1], [0, 0, 1, 1], [], []>} : vector<16x32xbf16>, vector<32x32xbf16>, vector<16x32xf32> -> vector<16x32xf32>
    %60 = arith.truncf %59 : vector<16x32xf32> to vector<16x32xbf16>
    %cst_41 = arith.constant dense<0.000000e+00> : vector<16x32xf32>
    %61 = tpu.matmul %0, %60, %cst_41 {dimension_numbers = #tpu.dot_dimension_numbers<[1], [0], [0], [1], [0, 0, 1, 1], [], []>} : vector<16x16xbf16>, vector<16x32xbf16>, vector<16x32xf32> -> vector<16x32xf32>
    %c5 = arith.constant 5 : index
    %c0_42 = arith.constant 0 : index
    %62 = vector.load %arg6[%c5, %c0_42] : memref<8x32xf32, #tpu.memory_space<vmem>>, vector<1x32xf32>
    %63 = vector.broadcast %62 : vector<1x32xf32> to vector<16x32xf32>
    %64 = arith.addf %61, %63 : vector<16x32xf32>
    %cst_43 = arith.constant 0.000000e+00 : f32
    %65 = vector.broadcast %cst_43 : f32 to vector<16x32xf32>
    %66 = arith.maximumf %64, %65 : vector<16x32xf32>
    %67 = arith.truncf %66 : vector<16x32xf32> to vector<16x32xbf16>
    %c5_44 = arith.constant 5 : index
    %c0_45 = arith.constant 0 : index
    %c0_46 = arith.constant 0 : index
    %68 = vector.load %arg5[%c5_44, %c0_45, %c0_46] : memref<7x32x32xbf16, #tpu.memory_space<vmem>>, vector<1x32x32xbf16>
    %69 = vector.shape_cast %68 : vector<1x32x32xbf16> to vector<32x32xbf16>
    %cst_47 = arith.constant dense<0.000000e+00> : vector<16x32xf32>
    %70 = tpu.matmul %67, %69, %cst_47 {dimension_numbers = #tpu.dot_dimension_numbers<[1], [0], [0], [1], [0, 0, 1, 1], [], []>} : vector<16x32xbf16>, vector<32x32xbf16>, vector<16x32xf32> -> vector<16x32xf32>
    %71 = arith.truncf %70 : vector<16x32xf32> to vector<16x32xbf16>
    %cst_48 = arith.constant dense<0.000000e+00> : vector<16x32xf32>
    %72 = tpu.matmul %0, %71, %cst_48 {dimension_numbers = #tpu.dot_dimension_numbers<[1], [0], [0], [1], [0, 0, 1, 1], [], []>} : vector<16x16xbf16>, vector<16x32xbf16>, vector<16x32xf32> -> vector<16x32xf32>
    %c6 = arith.constant 6 : index
    %c0_49 = arith.constant 0 : index
    %73 = vector.load %arg6[%c6, %c0_49] : memref<8x32xf32, #tpu.memory_space<vmem>>, vector<1x32xf32>
    %74 = vector.broadcast %73 : vector<1x32xf32> to vector<16x32xf32>
    %75 = arith.addf %72, %74 : vector<16x32xf32>
    %cst_50 = arith.constant 0.000000e+00 : f32
    %76 = vector.broadcast %cst_50 : f32 to vector<16x32xf32>
    %77 = arith.maximumf %75, %76 : vector<16x32xf32>
    %78 = arith.truncf %77 : vector<16x32xf32> to vector<16x32xbf16>
    %c6_51 = arith.constant 6 : index
    %c0_52 = arith.constant 0 : index
    %c0_53 = arith.constant 0 : index
    %79 = vector.load %arg5[%c6_51, %c0_52, %c0_53] : memref<7x32x32xbf16, #tpu.memory_space<vmem>>, vector<1x32x32xbf16>
    %80 = vector.shape_cast %79 : vector<1x32x32xbf16> to vector<32x32xbf16>
    %cst_54 = arith.constant dense<0.000000e+00> : vector<16x32xf32>
    %81 = tpu.matmul %78, %80, %cst_54 {dimension_numbers = #tpu.dot_dimension_numbers<[1], [0], [0], [1], [0, 0, 1, 1], [], []>} : vector<16x32xbf16>, vector<32x32xbf16>, vector<16x32xf32> -> vector<16x32xf32>
    %82 = arith.truncf %81 : vector<16x32xf32> to vector<16x32xbf16>
    %cst_55 = arith.constant dense<0.000000e+00> : vector<16x32xf32>
    %83 = tpu.matmul %0, %82, %cst_55 {dimension_numbers = #tpu.dot_dimension_numbers<[1], [0], [0], [1], [0, 0, 1, 1], [], []>} : vector<16x16xbf16>, vector<16x32xbf16>, vector<16x32xf32> -> vector<16x32xf32>
    %c7 = arith.constant 7 : index
    %c0_56 = arith.constant 0 : index
    %84 = vector.load %arg6[%c7, %c0_56] : memref<8x32xf32, #tpu.memory_space<vmem>>, vector<1x32xf32>
    %85 = vector.broadcast %84 : vector<1x32xf32> to vector<16x32xf32>
    %86 = arith.addf %83, %85 : vector<16x32xf32>
    %cst_57 = arith.constant 0.000000e+00 : f32
    %87 = vector.broadcast %cst_57 : f32 to vector<16x32xf32>
    %88 = arith.maximumf %86, %87 : vector<16x32xf32>
    %89 = arith.truncf %88 : vector<16x32xf32> to vector<16x32xbf16>
    %90 = arith.extf %89 : vector<16x32xbf16> to vector<16x32xf32>
    %c0_58 = arith.constant 0 : index
    %c0_59 = arith.constant 0 : index
    %91 = vector.load %arg3[%c0_58, %c0_59] : memref<16x2xf32, #tpu.memory_space<vmem>>, vector<16x2xf32>
    %92 = vector.extract_strided_slice %91 {offsets = [0, 0], sizes = [16, 1], strides = [1, 1]} : vector<16x2xf32> to vector<16x1xf32>
    %cst_60 = arith.constant 0.000000e+00 : f32
    %93 = vector.broadcast %cst_60 : f32 to vector<16x1xf32>
    %94 = arith.cmpf ogt, %92, %93 : vector<16x1xf32>
    %cst_61 = arith.constant -3.000000e+38 : f32
    %95 = vector.shape_cast %94 : vector<16x1xi1> to vector<16x1xi1>
    %96 = vector.broadcast %95 : vector<16x1xi1> to vector<16x32xi1>
    %97 = vector.broadcast %cst_61 : f32 to vector<16x32xf32>
    %98 = arith.select %96, %90, %97 : vector<16x32xi1>, vector<16x32xf32>
    %cst_62 = arith.constant dense<0xFF800000> : vector<32xf32>
    %99 = vector.multi_reduction <maximumf>, %98, %cst_62 [0] : vector<16x32xf32> to vector<32xf32>
    %100 = vector.shape_cast %99 : vector<32xf32> to vector<1x32xf32>
    %101 = vector.extract_strided_slice %91 {offsets = [0, 1], sizes = [16, 1], strides = [1, 1]} : vector<16x2xf32> to vector<16x1xf32>
    %cst_63 = arith.constant 0.000000e+00 : f32
    %102 = vector.broadcast %cst_63 : f32 to vector<16x1xf32>
    %103 = arith.cmpf ogt, %101, %102 : vector<16x1xf32>
    %cst_64 = arith.constant -3.000000e+38 : f32
    %104 = vector.shape_cast %103 : vector<16x1xi1> to vector<16x1xi1>
    %105 = vector.broadcast %104 : vector<16x1xi1> to vector<16x32xi1>
    %106 = vector.broadcast %cst_64 : f32 to vector<16x32xf32>
    %107 = arith.select %105, %90, %106 : vector<16x32xi1>, vector<16x32xf32>
    %cst_65 = arith.constant dense<0xFF800000> : vector<32xf32>
    %108 = vector.multi_reduction <maximumf>, %107, %cst_65 [0] : vector<16x32xf32> to vector<32xf32>
    %109 = vector.shape_cast %108 : vector<32xf32> to vector<1x32xf32>
    %110 = tpu.concatenate %100, %109 in 0 : vector<1x32xf32>, vector<1x32xf32> -> vector<2x32xf32>
    %c0_66 = arith.constant 0 : index
    %c0_67 = arith.constant 0 : index
    %111 = vector.load %arg7[%c0_66, %c0_67] : memref<32x32xf32, #tpu.memory_space<vmem>>, vector<32x32xf32>
    %cst_68 = arith.constant dense<0.000000e+00> : vector<2x32xf32>
    %112 = tpu.matmul %110, %111, %cst_68 {dimension_numbers = #tpu.dot_dimension_numbers<[1], [0], [0], [1], [0, 0, 1, 1], [], []>} : vector<2x32xf32>, vector<32x32xf32>, vector<2x32xf32> -> vector<2x32xf32>
    %c0_69 = arith.constant 0 : index
    %c0_70 = arith.constant 0 : index
    %113 = vector.load %arg8[%c0_69, %c0_70] : memref<1x32xf32, #tpu.memory_space<vmem>>, vector<1x32xf32>
    %114 = vector.broadcast %113 : vector<1x32xf32> to vector<2x32xf32>
    %115 = arith.addf %112, %114 : vector<2x32xf32>
    %cst_71 = arith.constant 0.000000e+00 : f32
    %116 = vector.broadcast %cst_71 : f32 to vector<2x32xf32>
    %117 = arith.maximumf %115, %116 : vector<2x32xf32>
    %c0_72 = arith.constant 0 : index
    %c0_73 = arith.constant 0 : index
    %118 = vector.load %arg9[%c0_72, %c0_73] : memref<32x3xf32, #tpu.memory_space<vmem>>, vector<32x3xf32>
    %cst_74 = arith.constant dense<0.000000e+00> : vector<2x3xf32>
    %119 = tpu.matmul %117, %118, %cst_74 {dimension_numbers = #tpu.dot_dimension_numbers<[1], [0], [0], [1], [0, 0, 1, 1], [], []>} : vector<2x32xf32>, vector<32x3xf32>, vector<2x3xf32> -> vector<2x3xf32>
    %c0_75 = arith.constant 0 : index
    %c0_76 = arith.constant 0 : index
    %120 = vector.load %arg10[%c0_75, %c0_76] : memref<1x3xf32, #tpu.memory_space<vmem>>, vector<1x3xf32>
    %121 = vector.broadcast %120 : vector<1x3xf32> to vector<2x3xf32>
    %122 = arith.addf %119, %121 : vector<2x3xf32>
    %c0_77 = arith.constant 0 : index
    %c0_78 = arith.constant 0 : index
    %123 = vector.load %arg11[%c0_77, %c0_78] : memref<2x3xf32, #tpu.memory_space<vmem>>, vector<2x3xf32>
    tpu.vector_store %arg11[%c0_77, %c0_78], %122 {strides = array<i32>} : memref<2x3xf32, #tpu.memory_space<vmem>>, vector<2x3xf32>,
    return
  }
  func.func @transform_0(%arg0: i32) -> (i32, i32) {
    %c0_i32 = arith.constant 0 : i32
    %c0_i32_0 = arith.constant 0 : i32
    %c0_i32_1 = arith.constant 0 : i32
    return %c0_i32, %c0_i32_0 : i32, i32
  }
  func.func @transform_1(%arg0: i32) -> (i32, i32) {
    %c0_i32 = arith.constant 0 : i32
    %c0_i32_0 = arith.constant 0 : i32
    %c0_i32_1 = arith.constant 0 : i32
    return %c0_i32, %c0_i32_0 : i32, i32
  }
  func.func @transform_2(%arg0: i32) -> (i32, i32) {
    %c0_i32 = arith.constant 0 : i32
    %c0_i32_0 = arith.constant 0 : i32
    %c0_i32_1 = arith.constant 0 : i32
    return %c0_i32, %c0_i32_0 : i32, i32
  }
  func.func @transform_3(%arg0: i32) -> (i32, i32) {
    %c0_i32 = arith.constant 0 : i32
    %c0_i32_0 = arith.constant 0 : i32
    %c0_i32_1 = arith.constant 0 : i32
    return %c0_i32, %c0_i32_0 : i32, i32
  }
  func.func @transform_4(%arg0: i32) -> (i32, i32, i32) {
    %c0_i32 = arith.constant 0 : i32
    %c0_i32_0 = arith.constant 0 : i32
    %c0_i32_1 = arith.constant 0 : i32
    %c0_i32_2 = arith.constant 0 : i32
    return %c0_i32, %c0_i32_0, %c0_i32_1 : i32, i32, i32
  }
  func.func @transform_5(%arg0: i32) -> (i32, i32) {
    %c0_i32 = arith.constant 0 : i32
    %c0_i32_0 = arith.constant 0 : i32
    %c0_i32_1 = arith.constant 0 : i32
    return %c0_i32, %c0_i32_0 : i32, i32
  }
  func.func @transform_6(%arg0: i32) -> (i32, i32) {
    %c0_i32 = arith.constant 0 : i32
    %c0_i32_0 = arith.constant 0 : i32
    %c0_i32_1 = arith.constant 0 : i32
    return %c0_i32, %c0_i32_0 : i32, i32
  }
  func.func @transform_7(%arg0: i32) -> (i32, i32) {
    %c0_i32 = arith.constant 0 : i32
    %c0_i32_0 = arith.constant 0 : i32
    %c0_i32_1 = arith.constant 0 : i32
    return %c0_i32, %c0_i32_0 : i32, i32
  }
  func.func @transform_8(%arg0: i32) -> (i32, i32) {
    %c0_i32 = arith.constant 0 : i32
    %c0_i32_0 = arith.constant 0 : i32
    %c0_i32_1 = arith.constant 0 : i32
    return %c0_i32, %c0_i32_0 : i32, i32
  }
  func.func @transform_9(%arg0: i32) -> (i32, i32) {
    %c0_i32 = arith.constant 0 : i32
    %c0_i32_0 = arith.constant 0 : i32
    %c0_i32_1 = arith.constant 0 : i32
    return %c0_i32, %c0_i32_0 : i32, i32
  }
  func.func @transform_10(%arg0: i32) -> (i32, i32) {
    %c0_i32 = arith.constant 0 : i32
    %c0_i32_0 = arith.constant 0 : i32
    %c0_i32_1 = arith.constant 0 : i32
    return %c0_i32, %c0_i32_0 : i32, i32
  }
}

</mosaic_0001>

<bundles_post_ra>
// kernel: ti_gcn_forward.1
= control target key start
LH: loop header
LB: loop body
LE: loop exit
PB: predicated region body
PF: predicated region fallthrough
CT: control target
= control target key end

     0   :  { %vm43_vm0 = vcmask 64512   ;;  %s1777_s0 = inlined_call_operand.vmem [shape: f32[16,8], index: 0, kind: input, shape index: {}]   ;;  %s1778_s1 = inlined_call_operand.vmem [shape: bf16[16,16], index: 1, kind: input, shape index: {}]   ;;  %s1779_s2 = inlined_call_operand.vmem [shape: f32[16,2], index: 2, kind: input, shape index: {}]   ;;  %s1780_s3 = inlined_call_operand.vmem [shape: bf16[8,32], index: 3, kind: input, shape index: {}]   ;;  %s1781_s4 = inlined_call_operand.vmem [shape: bf16[7,32,32], index: 4, kind: input, shape index: {}]   ;;  %s1782_s5 = inlined_call_operand.vmem [shape: f32[8,32], index: 5, kind: input, shape index: {}]   ;;  %s1783_s6 = inlined_call_operand.vmem [shape: f32[32,32], index: 6, kind: input, shape index: {}]   ;;  %s1784_s7 = inlined_call_operand.vmem [shape: f32[1,32], index: 7, kind: input, shape index: {}]   ;;  %s1785_s8 = inlined_call_operand.vmem [shape: f32[32,3], index: 8, kind: input, shape index: {}]   ;;  %s1786_s9 = inlined_call_operand.vmem [shape: f32[1,3], index: 9, kind: input, shape index: {}]   ;;  %s1787_s10 = inlined_call_operand.hbm [shape: f32[2,3], index: 10, kind: output, shape index: {}]  }
   0x1   :  { %v41_v0 = vld [vmem:[%s1780_s3] sm:$0xf]  ;;  %v40_v2 = vld [vmem:[%s1777_s0 + $0x8] sm:$0xff] }
   0x2   :  { %v39_v1 = vld [vmem:[%s1777_s0] sm:$0xff]  ;;  %v42_v3 = vunpack.c.l.bf16 %v41_v0 }
   0x3   :  { %1314 = vmatprep.mubr.msk.f32.mxu0 %vm43_vm0, %v39_v1 }
   0x4   :  { %1312 = vmatprep.subr.mxu0 %v42_v3 }
   0x5   :  { %1313 = vmatpush3.msra.mxu0 %v42_v3 }
   0x6   :  { %1315 = vmatmul.mubr.msk.f32.vlgmr.msra.gmra.mrb[0].mxu0 %vm43_vm0, %v40_v2 }
   0x7   :  { %15 = vsyncpa [#allocation3], 0  ;;  %v1503_v4 = vmov 0.0   ;;  %vm1504_vm1 = vmmov 0   ;;  %v1582_v8 = vld [vmem:[%s1778_s1] sm:$0xff]   ;;  %vm136_vm2 = vcmask 130048  }
   0x8   :  { %1317 = vmatprep.subr.bf16.mxu1 %v1503_v4  ;;  %1323 = vmatprep.subr.bf16.mxu0 %v1503_v4  ;;  %v1465_v9 = vld [vmem:[%s1781_s4] sm:$0xff]   ;;  %v1466_v10 = vld [vmem:[%s1781_s4 + $0x8] sm:$0xff]   ;;  %vm200_vm3 = vcmask 261120   ;;  %v1467_v26 = vld [vmem:[%s1781_s4 + $0x10] sm:$0xff]   ;;  %vm1007_vm10 = vcmask 1040384   ;;  %s1508_s16 = smov [#allocation2]  }
   0x9   :  { %1319 = vmatprep.mubr.msk.bf16.mxu1 %vm1504_vm1, %v1503_v4  ;;  %1327 = vmatprep.mubr.msk.bf16.mxu0 %vm1504_vm1, %v1503_v4  ;;  %v1196_v11 = vld [vmem:[%s1782_s5] ss:$0 sm:$0xff]  ;;  %v1468_v27 = vld [vmem:[%s1781_s4 + $0x18] sm:$0xff]   ;;  %v1202_v28 = vld [vmem:[%s1782_s5 + $0x1] ss:$0 sm:$0xff]  ;;  %vm1178_vm11 = vcmask 17408  }
   0xa   :  { %1324 = vmatpush3.bf16.msra.mxu0 %v1465_v9  ;;  %v1469_v43 = vld [vmem:[%s1781_s4 + $0x20] sm:$0xff]   ;;  %v1470_v44 = vld [vmem:[%s1781_s4 + $0x28] sm:$0xff]   ;;  %v1471_v60 = vld [vmem:[%s1781_s4 + $0x30] sm:$0xff]  }
   0xb   :  { %1325 = vmatprep.subr.bf16.mxu0 %v1503_v4  ;;  %v1211_v45 = vld [vmem:[%s1782_s5 + $0x2] ss:$0 sm:$0xff]  ;;  %v1472_v61 = vld [vmem:[%s1781_s4 + $0x38] sm:$0xff]   ;;  %v1220_v62 = vld [vmem:[%s1782_s5 + $0x3] ss:$0 sm:$0xff] }
   0xe   :  { %1326 = vmatpush3.bf16.msra.mxu0 %v1466_v10 }
   0xf   :  { %1337 = vmatprep.subr.bf16.mxu0 %v1503_v4 }
  0xd9   :  { %v1316_v5 = vpop.f32.mrb[0].mxu0 }
  0xda   :  { %v116_v6 = vpop.f32.mrb[1].mxu0 }
  0xdb   :  { %v125_v7 = vpack.c.bf16 %v1316_v5, %v116_v6 }
  0xdd   :  { %1318 = vmatpush3.bf16.msra.mxu1 %v125_v7 }
  0xde   :  { %1331 = vmatprep.subr.bf16.mxu1 %v1503_v4 }
  0xe0   :  { %1320 = vmatmul.mubr.msk.bf16.vlgmr.msra.gmra.mrb[0].mxu1 %vm136_vm2, %v1582_v8 }
  0xe1   :  { %1333 = vmatprep.mubr.msk.bf16.mxu1 %vm1504_vm1, %v1503_v4 }
 0x1b3   :  { %v174_v12 = vpop.f32.mrb[0].mxu1 }
 0x1b4   :  { %v175_v13 = vadd.f32 %v1196_v11, %v174_v12  ;;  %v1321_v14 = vpop.f32.mrb[1].mxu1 }
 0x1b5   :  { %v177_v15 = vpop.f32.mrb[2].mxu1 }
 0x1b6   :  { %v178_v16 = vadd.f32 %v1196_v11, %v177_v15  ;;  %v1322_v17 = vpop.f32.mrb[3].mxu1  ;;  %v181_v18 = vmax.f32 %v175_v13, 0.0  ;;  %v1473_v15 = vld [vmem:[%s1781_s4 + $0x40] sm:$0xff]  }
 0x1b7   :  { %v1229_v17 = vld [vmem:[%s1782_s5 + $0x4] ss:$0 sm:$0xff] }
 0x1b8   :  { %v182_v19 = vmax.f32 %v178_v16, 0.0  ;;  %v1474_v16 = vld [vmem:[%s1781_s4 + $0x48] sm:$0xff]  }
 0x1ba   :  { %v183_v20 = vpack.c.bf16 %v182_v19, %v181_v18 }
 0x1bc   :  { %1328 = vmatmul.mubr.msk.bf16.vlgmr.msra.gmra.mrb[4].mxu0 %vm200_vm3, %v183_v20 }
 0x1bd   :  { %1341 = vmatprep.mubr.msk.bf16.mxu0 %vm1504_vm1, %v1503_v4  ;;  %1338 = vmatpush3.bf16.msra.mxu0 %v1467_v26 }
 0x1be   :  { %1339 = vmatprep.subr.bf16.mxu0 %v1503_v4 }
 0x1c1   :  { %1340 = vmatpush3.bf16.msra.mxu0 %v1468_v27 }
 0x1c2   :  { %1351 = vmatprep.subr.bf16.mxu0 %v1503_v4 }
 0x28f   :  { %v238_v21 = vpop.f32.mrb[4].mxu0 }
 0x290   :  { %v1329_v22 = vpop.f32.mrb[5].mxu0 }
 0x291   :  { %v241_v23 = vpop.f32.mrb[6].mxu0 }
 0x292   :  { %v245_v24 = vpack.c.bf16 %v241_v23, %v238_v21  ;;  %v1330_v25 = vpop.f32.mrb[7].mxu0 }
 0x294   :  { %1332 = vmatpush3.bf16.msra.mxu1 %v245_v24 }
 0x295   :  { %1345 = vmatprep.subr.bf16.mxu1 %v1503_v4 }
 0x297   :  { %1334 = vmatmul.mubr.msk.bf16.vlgmr.msra.gmra.mrb[4].mxu1 %vm136_vm2, %v1582_v8 }
 0x298   :  { %1347 = vmatprep.mubr.msk.bf16.mxu1 %vm1504_vm1, %v1503_v4 }
 0x36a   :  { %v285_v29 = vpop.f32.mrb[4].mxu1 }
 0x36b   :  { %v286_v30 = vadd.f32 %v1202_v28, %v285_v29  ;;  %v1335_v31 = vpop.f32.mrb[5].mxu1 }
 0x36c   :  { %v288_v32 = vpop.f32.mrb[6].mxu1 }
 0x36d   :  { %v289_v33 = vadd.f32 %v1202_v28, %v288_v32  ;;  %v1336_v34 = vpop.f32.mrb[7].mxu1  ;;  %v292_v35 = vmax.f32 %v286_v30, 0.0  ;;  %v1475_v32 = vld [vmem:[%s1781_s4 + $0x50] sm:$0xff]  }
 0x36e   :  { %v1238_v34 = vld [vmem:[%s1782_s5 + $0x5] ss:$0 sm:$0xff] }
 0x36f   :  { %v293_v36 = vmax.f32 %v289_v33, 0.0  ;;  %v1476_v33 = vld [vmem:[%s1781_s4 + $0x58] sm:$0xff]  }
 0x371   :  { %v294_v37 = vpack.c.bf16 %v293_v36, %v292_v35 }
 0x373   :  { %1342 = vmatmul.mubr.msk.bf16.vlgmr.msra.gmra.mrb[8].mxu0 %vm200_vm3, %v294_v37 }
 0x374   :  { %1355 = vmatprep.mubr.msk.bf16.mxu0 %vm1504_vm1, %v1503_v4  ;;  %1352 = vmatpush3.bf16.msra.mxu0 %v1469_v43 }
 0x375   :  { %1353 = vmatprep.subr.bf16.mxu0 %v1503_v4 }
 0x378   :  { %1354 = vmatpush3.bf16.msra.mxu0 %v1470_v44 }
 0x379   :  { %1365 = vmatprep.subr.bf16.mxu0 %v1503_v4 }
 0x446   :  { %v349_v38 = vpop.f32.mrb[8].mxu0 }
 0x447   :  { %v1343_v39 = vpop.f32.mrb[9].mxu0 }
 0x448   :  { %v352_v40 = vpop.f32.mrb[10].mxu0 }
 0x449   :  { %v356_v41 = vpack.c.bf16 %v352_v40, %v349_v38  ;;  %v1344_v42 = vpop.f32.mrb[11].mxu0 }
 0x44b   :  { %1346 = vmatpush3.bf16.msra.mxu1 %v356_v41 }
 0x44c   :  { %1359 = vmatprep.subr.bf16.mxu1 %v1503_v4 }
 0x44e   :  { %1348 = vmatmul.mubr.msk.bf16.vlgmr.msra.gmra.mrb[8].mxu1 %vm136_vm2, %v1582_v8 }
 0x44f   :  { %1361 = vmatprep.mubr.msk.bf16.mxu1 %vm1504_vm1, %v1503_v4 }
 0x521   :  { %v396_v46 = vpop.f32.mrb[8].mxu1 }
 0x522   :  { %v397_v47 = vadd.f32 %v1211_v45, %v396_v46  ;;  %v1349_v48 = vpop.f32.mrb[9].mxu1 }
 0x523   :  { %v399_v49 = vpop.f32.mrb[10].mxu1 }
 0x524   :  { %v400_v50 = vadd.f32 %v1211_v45, %v399_v49  ;;  %v1350_v51 = vpop.f32.mrb[11].mxu1  ;;  %v403_v52 = vmax.f32 %v397_v47, 0.0  ;;  %v1477_v49 = vld [vmem:[%s1781_s4 + $0x60] sm:$0xff]  }
 0x525   :  { %v1247_v51 = vld [vmem:[%s1782_s5 + $0x6] ss:$0 sm:$0xff] }
 0x526   :  { %v404_v53 = vmax.f32 %v400_v50, 0.0  ;;  %v1478_v50 = vld [vmem:[%s1781_s4 + $0x68] sm:$0xff]   ;;  %s1186_s4 = sshll.u32 %s1508_s16, 4  ;;  %s1187_s4 = int_to_ptr.vmem [resolvable:$true] %s1186_s4 }
 0x527   :  { %p1484_p1 = scmp.lt.s32.totalorder %s1187_s4, %s1187_s4 }
 0x528   :  { %v405_v54 = vpack.c.bf16 %v404_v53, %v403_v52 }
 0x52a   :  { %1356 = vmatmul.mubr.msk.bf16.vlgmr.msra.gmra.mrb[12].mxu0 %vm200_vm3, %v405_v54 }
 0x52b   :  { %1369 = vmatprep.mubr.msk.bf16.mxu0 %vm1504_vm1, %v1503_v4  ;;  %1366 = vmatpush3.bf16.msra.mxu0 %v1471_v60 }
 0x52c   :  { %1367 = vmatprep.subr.bf16.mxu0 %v1503_v4 }
 0x52f   :  { %1368 = vmatpush3.bf16.msra.mxu0 %v1472_v61  ;;  %v963_v61 = vld [vmem:[%s1779_s2] sm:$0xff] }
 0x530   :  { %1379 = vmatprep.subr.bf16.mxu0 %v1503_v4  ;;  %vm965_vm4 = vcmp.gt.f32.partialorder %v963_v61, 0.0 }
 0x5fd   :  { %v460_v55 = vpop.f32.mrb[12].mxu0 }
 0x5fe   :  { %v1357_v56 = vpop.f32.mrb[13].mxu0 }
 0x5ff   :  { %v463_v57 = vpop.f32.mrb[14].mxu0 }
 0x600   :  { %v467_v58 = vpack.c.bf16 %v463_v57, %v460_v55  ;;  %v1358_v59 = vpop.f32.mrb[15].mxu0 }
 0x602   :  { %1360 = vmatpush3.bf16.msra.mxu1 %v467_v58 }
 0x603   :  { %1373 = vmatprep.subr.bf16.mxu1 %v1503_v4 }
 0x605   :  { %1362 = vmatmul.mubr.msk.bf16.vlgmr.msra.gmra.mrb[12].mxu1 %vm136_vm2, %v1582_v8 }
 0x606   :  { %1375 = vmatprep.mubr.msk.bf16.mxu1 %vm1504_vm1, %v1503_v4 }
 0x6d8   :  { %v507_v63 = vpop.f32.mrb[12].mxu1 }
 0x6d9   :  { %v508_v0 = vadd.f32 %v1220_v62, %v507_v63  ;;  %v1363_v1 = vpop.f32.mrb[13].mxu1  ;;  %v1505_v63 = vmov 1  }
 0x6da   :  { %v510_v2 = vpop.f32.mrb[14].mxu1  ;;  %1462 = vset.pattern.permute.xlu1 %v1505_v63 }
 0x6db   :  { %v511_v3 = vadd.f32 %v1220_v62, %v510_v2  ;;  %v1364_v5 = vpop.f32.mrb[15].mxu1  ;;  %v514_v6 = vmax.f32 %v508_v0, 0.0  ;;  %v964_v62 = vld [vmem:[%s1779_s2 + $0x8] sm:$0xff]  ;;  %v1506_v0 = vmov 0  }
 0x6dc   :  { %1461 = vset.pattern.permute.xlu0 %v1506_v0  ;;  %vm966_vm5 = vcmp.gt.f32.partialorder %v964_v62, 0.0  ;;  %v967_v1 = vsel %vm965_vm4, 1, %v1506_v0 }
 0x6dd   :  { %v515_v7 = vmax.f32 %v511_v3, 0.0  ;;  %989 = vperm.xlu1 %1462, %v967_v1   ;;  %970 = vperm.xlu0 %1461, %v967_v1   ;;  %v968_v2 = vsel %vm966_vm5, 1, %v1506_v0  ;;  %v1260_v1 = vld [vmem:[%s1786_s9] ss:$0 sm:$0xff] }
 0x6df   :  { %v516_v9 = vpack.c.bf16 %v515_v7, %v514_v6 }
 0x6e1   :  { %1370 = vmatmul.mubr.msk.bf16.vlgmr.msra.gmra.mrb[16].mxu0 %vm200_vm3, %v516_v9  ;;  %992 = vperm.xlu1 %1462, %v968_v2  }
 0x6e2   :  { %1383 = vmatprep.mubr.msk.bf16.mxu0 %vm1504_vm1, %v1503_v4  ;;  %1380 = vmatpush3.bf16.msra.mxu0 %v1473_v15  ;;  %v1094_v15 = vld [vmem:[%s1785_s8] sm:$0xff] }
 0x6e3   :  { %1381 = vmatprep.subr.bf16.mxu0 %v1503_v4  ;;  %973 = vperm.xlu0 %1461, %v968_v2  }
 0x6e6   :  { %1382 = vmatpush3.bf16.msra.mxu0 %v1474_v16  ;;  %v1095_v16 = vld [vmem:[%s1785_s8 + $0x8] sm:$0xff] }
 0x6e7   :  { %1393 = vmatprep.subr.bf16.mxu0 %v1503_v4  ;;  %1463 = vset.pattern.permute.xlu0 %v1505_v63 }
 0x7b4   :  { %v571_v10 = vpop.f32.mrb[16].mxu0 }
 0x7b5   :  { %v1371_v11 = vpop.f32.mrb[17].mxu0 }
 0x7b6   :  { %v574_v12 = vpop.f32.mrb[18].mxu0  ;;  %v1010_v11 = vld [vmem:[%s1783_s6 + $0x8] sm:$0xff] }
 0x7b7   :  { %v578_v13 = vpack.c.bf16 %v574_v12, %v571_v10  ;;  %v1372_v14 = vpop.f32.mrb[19].mxu0  ;;  %v1009_v10 = vld [vmem:[%s1783_s6] sm:$0xff] }
 0x7b8   :  { %v1444_v12 = vpack.c.bf16 %v1010_v11, %v1009_v10 }
 0x7b9   :  { %1374 = vmatpush3.bf16.msra.mxu1 %v578_v13  ;;  %v1507_v13 = vmov 0.0|0.0  }
 0x7ba   :  { %1387 = vmatprep.subr.bf16.mxu1 %v1503_v4 }
 0x7bc   :  { %1376 = vmatmul.mubr.msk.bf16.vlgmr.msra.gmra.mrb[16].mxu1 %vm136_vm2, %v1582_v8 }
 0x7bd   :  { %1389 = vmatprep.mubr.msk.bf16.mxu1 %vm1504_vm1, %v1503_v4 }
 0x88f   :  { %v618_v18 = vpop.f32.mrb[16].mxu1 }
 0x890   :  { %v619_v19 = vadd.f32 %v1229_v17, %v618_v18  ;;  %v1377_v20 = vpop.f32.mrb[17].mxu1  ;;  %v1256_v18 = vld [vmem:[%s1782_s5 + $0x7] ss:$0 sm:$0xff] }
 0x891   :  { %v621_v21 = vpop.f32.mrb[18].mxu1  ;;  %v990_v20 = vpop.permute.xlu1 %989 }
 0x892   :  { %v622_v22 = vadd.f32 %v1229_v17, %v621_v21  ;;  %v1378_v23 = vpop.f32.mrb[19].mxu1  ;;  %v625_v24 = vmax.f32 %v619_v19, 0.0  ;;  %v1450_v17 = vpack.c.bf16 %v1095_v16, %v1094_v15  ;;  %vm994_vm6 = vcmp.eq.s32.totalorder %v990_v20, 1 }
 0x893   :  { %v971_v23 = vpop.permute.xlu0 %970 }
 0x894   :  { %v626_v25 = vmax.f32 %v622_v22, 0.0  ;;  %vm975_vm7 = vcmp.eq.s32.totalorder %v971_v23, 1 }
 0x896   :  { %v627_v26 = vpack.c.bf16 %v626_v25, %v625_v24 }
 0x898   :  { %1384 = vmatmul.mubr.msk.bf16.vlgmr.msra.gmra.mrb[20].mxu0 %vm200_vm3, %v627_v26 }
 0x899   :  { %1397 = vmatprep.mubr.msk.bf16.mxu0 %vm1504_vm1, %v1503_v4  ;;  %1394 = vmatpush3.bf16.msra.mxu0 %v1475_v32 }
 0x89a   :  { %1395 = vmatprep.subr.bf16.mxu0 %v1503_v4 }
 0x89d   :  { %1396 = vmatpush3.bf16.msra.mxu0 %v1476_v33 }
 0x89e   :  { %1407 = vmatprep.subr.bf16.mxu0 %v1503_v4 }
 0x96b   :  { %v682_v27 = vpop.f32.mrb[20].mxu0 }
 0x96c   :  { %v1385_v28 = vpop.f32.mrb[21].mxu0 }
 0x96d   :  { %v685_v29 = vpop.f32.mrb[22].mxu0 }
 0x96e   :  { %v689_v30 = vpack.c.bf16 %v685_v29, %v682_v27  ;;  %v1386_v31 = vpop.f32.mrb[23].mxu0 }
 0x96f   :  { %v974_v31 = vpop.permute.xlu0 %973 }
 0x970   :  { %1388 = vmatpush3.bf16.msra.mxu1 %v689_v30  ;;  %v993_v30 = vpop.permute.xlu1 %992  ;;  %vm976_vm9 = vcmp.eq.s32.totalorder %v974_v31, 1 }
 0x971   :  { %1401 = vmatprep.subr.bf16.mxu1 %v1503_v4  ;;  %vm995_vm8 = vcmp.eq.s32.totalorder %v993_v30, 1 }
 0x973   :  { %1390 = vmatmul.mubr.msk.bf16.vlgmr.msra.gmra.mrb[20].mxu1 %vm136_vm2, %v1582_v8 }
 0x974   :  { %1403 = vmatprep.mubr.msk.bf16.mxu1 %vm1504_vm1, %v1503_v4 }
 0xa46   :  { %v729_v35 = vpop.f32.mrb[20].mxu1 }
 0xa47   :  { %v730_v36 = vadd.f32 %v1238_v34, %v729_v35  ;;  %v1391_v37 = vpop.f32.mrb[21].mxu1 }
 0xa48   :  { %v732_v38 = vpop.f32.mrb[22].mxu1 }
 0xa49   :  { %v733_v39 = vadd.f32 %v1238_v34, %v732_v38  ;;  %v1392_v40 = vpop.f32.mrb[23].mxu1  ;;  %v736_v41 = vmax.f32 %v730_v36, 0.0 }
 0xa4b   :  { %v737_v42 = vmax.f32 %v733_v39, 0.0 }
 0xa4d   :  { %v738_v43 = vpack.c.bf16 %v737_v42, %v736_v41 }
 0xa4f   :  { %1398 = vmatmul.mubr.msk.bf16.vlgmr.msra.gmra.mrb[24].mxu0 %vm200_vm3, %v738_v43 }
 0xa50   :  { %1411 = vmatprep.mubr.msk.bf16.mxu0 %vm1504_vm1, %v1503_v4  ;;  %1408 = vmatpush3.bf16.msra.mxu0 %v1477_v49 }
 0xa51   :  { %1409 = vmatprep.subr.bf16.mxu0 %v1503_v4 }
 0xa54   :  { %1410 = vmatpush3.bf16.msra.mxu0 %v1478_v50 }
 0xa55   :  { %1443 = vmatprep.subr.bf16.mxu0 %v1507_v13 }
 0xb22   :  { %v793_v44 = vpop.f32.mrb[24].mxu0 }
 0xb23   :  { %v1399_v45 = vpop.f32.mrb[25].mxu0 }
 0xb24   :  { %v796_v46 = vpop.f32.mrb[26].mxu0 }
 0xb25   :  { %v800_v47 = vpack.c.bf16 %v796_v46, %v793_v44  ;;  %v1400_v48 = vpop.f32.mrb[27].mxu0 }
 0xb27   :  { %1402 = vmatpush3.bf16.msra.mxu1 %v800_v47 }
 0xb28   :  { %1415 = vmatprep.subr.bf16.mxu1 %v1503_v4 }
 0xb2a   :  { %1404 = vmatmul.mubr.msk.bf16.vlgmr.msra.gmra.mrb[24].mxu1 %vm136_vm2, %v1582_v8 }
 0xb2b   :  { %1417 = vmatprep.mubr.msk.bf16.mxu1 %vm1504_vm1, %v1503_v4 }
 0xbfd   :  { %v840_v52 = vpop.f32.mrb[24].mxu1 }
 0xbfe   :  { %v841_v53 = vadd.f32 %v1247_v51, %v840_v52  ;;  %v1405_v54 = vpop.f32.mrb[25].mxu1 }
 0xbff   :  { %v843_v55 = vpop.f32.mrb[26].mxu1 }
 0xc00   :  { %v844_v56 = vadd.f32 %v1247_v51, %v843_v55  ;;  %v1406_v57 = vpop.f32.mrb[27].mxu1  ;;  %v847_v58 = vmax.f32 %v841_v53, 0.0 }
 0xc01   :  { %v1096_v57 = vld [vmem:[%s1785_s8 + $0x10] sm:$0xff] }
 0xc02   :  { %v848_v59 = vmax.f32 %v844_v56, 0.0 }
 0xc04   :  { %v849_v60 = vpack.c.bf16 %v848_v59, %v847_v58  ;;  %v1097_v58 = vld [vmem:[%s1785_s8 + $0x18] sm:$0xff]  ;;  %s1479_s8 = scalar_lea.vmem %s1187_s4, 32 }
 0xc05   :  { %v1453_v59 = vpack.c.bf16 %v1097_v58, %v1096_v57  ;;  %p1480_p0 = scmp.ne.s32.totalorder %s1187_s4, %s1479_s8  ;;  %p1485_p2 = scmp.lt.s32.totalorder %s1479_s8, %s1479_s8 }
 0xc06   :  { %1412 = vmatmul.mubr.msk.bf16.vlgmr.msra.gmra.mrb[28].mxu0 %vm200_vm3, %v849_v60  ;;  %v1258_v60 = vld [vmem:[%s1784_s7] ss:$0 sm:$0xff] }
 0xc07   :  { %1429 = vmatprep.mubr.msk.f32.mxu0 %vm1504_vm1, %v1503_v4  ;;  %1445 = vmatpush3.bf16.msra.mxu0 %v1444_v12  ;;  %p1486_p3 = por %p1485_p2, %p1484_p1 }
 0xc08   :  { %1446 = vmatprep.subr.bf16.mxu0 %v1507_v13 }
 0xc09   :  { %p1487_p4 = pnand %p1486_p3, %p1480_p0 }
 0xcd9   :  { %v904_v3 = vpop.f32.mrb[28].mxu0 }
 0xcda   :  { %v1413_v5 = vpop.f32.mrb[29].mxu0 }
 0xcdb   :  { %v907_v6 = vpop.f32.mrb[30].mxu0 }
 0xcdc   :  { %v911_v7 = vpack.c.bf16 %v907_v6, %v904_v3  ;;  %v1414_v9 = vpop.f32.mrb[31].mxu0 }
 0xcde   :  { %1416 = vmatpush3.bf16.msra.mxu1 %v911_v7 }
 0xcdf   :  { %1449 = vmatprep.subr.bf16.mxu1 %v1507_v13 }
 0xce1   :  { %1418 = vmatmul.mubr.msk.bf16.vlgmr.msra.gmra.mrb[28].mxu1 %vm136_vm2, %v1582_v8  ;;  %v1011_v8 = vld [vmem:[%s1783_s6 + $0x10] sm:$0xff] }
 0xce2   :  { %1440 = vmatprep.mubr.msk.f32.mxu1 %vm1504_vm1, %v1503_v4  ;;  %v1012_v4 = vld [vmem:[%s1783_s6 + $0x18] sm:$0xff]  ;;  %1451 = vmatpush3.bf16.msra.mxu1 %v1450_v17 }
 0xce3   :  { %v1447_v14 = vpack.c.bf16 %v1012_v4, %v1011_v8  ;;  %1452 = vmatprep.subr.bf16.mxu1 %v1507_v13 }
 0xce5   :  { %1448 = vmatpush3.bf16.msra.mxu0 %v1447_v14 }
 0xce6   :  { %1454 = vmatpush3.bf16.msra.mxu1 %v1453_v59 }
 0xdb4   :  { %v951_v19 = vpop.f32.mrb[28].mxu1 }
 0xdb5   :  { %v952_v21 = vadd.f32 %v1256_v18, %v951_v19  ;;  %v1419_v22 = vpop.f32.mrb[29].mxu1 }
 0xdb6   :  { %v954_v24 = vpop.f32.mrb[30].mxu1 }
 0xdb7   :  { %v955_v25 = vadd.f32 %v1256_v18, %v954_v24  ;;  %v1420_v26 = vpop.f32.mrb[31].mxu1  ;;  %v958_v27 = vmax.f32 %v952_v21, 0.0 }
 0xdb9   :  { %v959_v28 = vmax.f32 %v955_v25, 0.0 }
 0xdbb   :  { %v960_v29 = vpack.c.bf16 %v959_v28, %v958_v27 }
 0xdbd   :  { %v961_v32 = vunpack.c.l.bf16 %v960_v29  ;;  %v962_v33 = vunpack.c.h.bf16 %v960_v29 }
 0xdbf   :  { %v996_v34 = vsel %vm994_vm6, %v961_v32, -3e+38  ;;  %v977_v35 = vsel %vm975_vm7, %v961_v32, -3e+38  ;;  %v997_v36 = vsel %vm995_vm8, %v962_v33, -3e+38 }
 0xdc0   :  { %v998_v37 = vsel %vm200_vm3, %v996_v34, -inf  ;;  %v979_v38 = vsel %vm200_vm3, %v977_v35, -inf  ;;  %v999_v39 = vsel %vm200_vm3, %v997_v36, -inf  ;;  %v978_v40 = vsel %vm976_vm9, %v962_v33, -3e+38 }
 0xdc1   :  { %v1000_v41 = vmax.f32 %v998_v37, %v999_v39  ;;  %v980_v42 = vsel %vm200_vm3, %v978_v40, -inf }
 0xdc2   :  { %v981_v43 = vmax.f32 %v979_v38, %v980_v42 }
 0xdc3   :  { %v1001_v44 = vrot.slane %v1000_v41, 4 }
 0xdc4   :  { %v982_v45 = vrot.slane %v981_v43, 4 }
 0xdc5   :  { %v1002_v46 = vmax.f32 %v1000_v41, %v1001_v44 }
 0xdc6   :  { %v983_v47 = vmax.f32 %v981_v43, %v982_v45 }
 0xdc7   :  { %v1003_v48 = vrot.slane %v1002_v46, 2 }
 0xdc8   :  { %v984_v49 = vrot.slane %v983_v47, 2 }
 0xdc9   :  { %v1004_v50 = vmax.f32 %v1002_v46, %v1003_v48 }
 0xdca   :  { %v985_v51 = vmax.f32 %v983_v47, %v984_v49 }
 0xdcb   :  { %v1005_v52 = vrot.slane %v1004_v50, 1 }
 0xdcc   :  { %v986_v53 = vrot.slane %v985_v51, 1 }
 0xdcd   :  { %v1006_v54 = vmax.f32 %v1004_v50, %v1005_v52 }
 0xdce   :  { %v987_v55 = vmax.f32 %v985_v51, %v986_v53 }
 0xdd0   :  { %v1008_v56 = vsel %vm1007_vm10, %v987_v55, %v1006_v54 }
 0xdd1   :  { %1430 = vmatmul.mubr.msk.f32.vlgmr.msra.gmra.mrb[2].mxu0 %vm200_vm3, %v1008_v56 }
 0xea4   :  { %v1089_v61 = vpop.f32.mrb[2].mxu0 }
 0xea5   :  { %v1090_v62 = vadd.f32 %v1258_v60, %v1089_v61  ;;  %v1431_v63 = vpop.f32.mrb[3].mxu0 }
 0xea7   :  { %v1093_v0 = vmax.f32 %v1090_v62, 0.0 }
 0xea9   :  { %1441 = vmatmul.mubr.msk.f32.vlgmr.msra.gmra.mrb[32].mxu1 %vm200_vm3, %v1093_v0 }
 0xf7c   :  { %v1174_v2 = vpop.f32.mrb[32].mxu1 }
 0xf7d   :  { %v1175_v3 = vadd.f32 %v1260_v1, %v1174_v2  ;;  %v1442_v5 = vpop.f32.mrb[33].mxu1 }
 0xf7f   :  { %1179 = vst.msk [vmem:[#allocation2] sm:$0x3] %vm1178_vm11, %v1175_v3 }
 0xf80   :  { %1490 = shalt.err (!%p1487_p4)
}
 0xf81   :  { %s1491_s18 = scalar_lea.hbm %s1787_s10, 32 }
 0xf82   :  { %p1492_p5 = scmp.ne.s32.totalorder %s1787_s10, %s1491_s18  ;;  %p1495_p6 = scmp.lt.u32.totalorder %s1491_s18, %s1787_s10 }
 0xf84   :  { %p1497_p7 = pnand %p1495_p6, %p1492_p5 }
 0xf86   :  { %1500 = shalt.err (!%p1497_p7)
}
 0xf87   :  { %1189 = dma.vmem_to_hbm [thread:$0]  %s1187_s4, 32, %s1787_s10, [#allocation3]  }
 0xf88   :  { %1501 = dma.done.wait [#allocation3], 32  }
 0xf89   :  { %1502 = vsyncadd [#allocation3], 4294967264 }
 0xf8a   :  { %1193 = vsyncpa [#allocation3], 1 }

</bundles_post_ra>
